<compile_context>
chip_gen: v5e
topology: v5e:2x2
jax: 0.10.0
libtpu: 0.0.40
codegen_flags: <defaults>
</compile_context>

<pallas_src>
import functools

import jax
import jax.numpy as jnp
from jax.experimental import pallas as pl
from jax.experimental.pallas import tpu as pltpu


def _attn_pool_kernel(x_ref, w1_ref, b1_ref, w2row_ref, b2_ref, o_ref):
    tb, d, f = x_ref.shape
    h_dim = w1_ref.shape[1]

    x = x_ref[...]                                             # (TB, D, F), streamed dtype

    # ---- score MLP: one (TB*D, F) @ (F, H) MXU matmul, f32 accumulation ----
    xf = x.reshape(tb * d, f)                                  # free retile when D % 8 == 0
    h = jnp.dot(xf, w1_ref[...], preferred_element_type=jnp.float32)   # (TB*D, H) f32
    h = jnp.maximum(h + b1_ref[...], 0.0)                      # bias + ReLU (VPU, f32)

    # ---- second linear (H -> 1) as VPU mul + lane reduction (no N=1 MXU matmul) ----
    h3 = h.reshape(tb, d, h_dim)                               # (TB, D, H)
    w2_row = w2row_ref[...].reshape(1, 1, h_dim)               # (1, 1, H), explicit rank
    s = jnp.sum(h3 * w2_row, axis=-1, keepdims=True)           # (TB, D, 1)
    s = s + b2_ref[0]                                          # scalar bias from SMEM

    # ---- numerically stable softmax over D (per batch row) ----
    m = jnp.max(s, axis=1, keepdims=True)                      # (TB, 1, 1)
    p = jnp.exp(s - m)                                         # (TB, D, 1)  (EUP)
    denom = jnp.sum(p, axis=1, keepdims=True)                  # (TB, 1, 1)
    inv = pl.reciprocal(denom, approx=True)                    # EUP slot
    inv = inv * (2.0 - denom * inv)                            # Newton step -> ~f32 accuracy
    a = p * inv                                                # (TB, D, 1)

    # ---- weighted sum over D: broadcast-mul (VPU) + sublane reduce (XLU), f32 acc ----
    out = jnp.sum(x.astype(jnp.float32) * a, axis=1)           # (TB, F)
    o_ref[...] = out.astype(o_ref.dtype)


def _vmem_plan():
    """Per-generation (x-block byte budget, vmem_limit_bytes).

    Live set per grid step ~ 2x the x block (double-buffered input) plus ~1.5-2x the
    block size of f32 intermediates (h, weighted-sum temp, f32 upcast of a bf16 block),
    which must fit under the scoped VMEM limit with headroom.
    """
    vmem_bytes = None
    try:
        info = pltpu.get_tpu_info()
        for attr in ("vmem_capacity_bytes", "vmem_bytes", "vmem_size_bytes"):
            v = getattr(info, attr, None)
            if isinstance(v, int) and v > 0:
                vmem_bytes = v
                break
    except Exception:
        pass
    if vmem_bytes is None or vmem_bytes <= (64 << 20):
        # v7x (64 MiB physical per TC) or unknown generation: conservative, safe plan.
        return 8 << 20, 48 << 20
    # v5e / v6e: 128 MiB physical but only 16/32 MiB default scoped VMEM -> raise it.
    return 14 << 20, 96 << 20


def _pick_batch_tile(B, D, F, itemsize, *, block_budget_bytes, min_grid_steps=2):
    """Batch rows per grid step.

    * Size the (TB, D, F) x block from the per-generation VMEM budget (the Pallas
      pipeline double-buffers it).  Bigger blocks amortize the ~0.35 us per-grid-step
      overhead: sub-MiB tiles reach only ~30-60% of the HBM roofline vs ~85%+ at
      multi-MiB tiles.
    * Keep at least `min_grid_steps` grid steps so dimension_semantics=("parallel",)
      can use both v7x TensorCores and DMA/compute overlap exists.
    * Align TB down to 8 sublanes so the (TB, F) output block stores are unmasked.
    The budget is applied to the f32-equivalent footprint so that f32 intermediates are
    accounted for even when x is streamed as bf16.
    """
    bytes_per_row = max(1, D * F * max(4, itemsize))
    tb = max(1, block_budget_bytes // bytes_per_row)
    tb = min(tb, max(1, pl.cdiv(B, min_grid_steps)))   # guarantee >= min_grid_steps steps
    if tb >= B:
        return int(B)
    if tb >= 8:
        return int((tb // 8) * 8)
    # Tiny per-row budget (huge D*F): the (TB, F) output block's sublane dim must be a
    # multiple of 8 (or the full batch), so clamp to min(B, 8).
    # TODO(synk): for very large D*F, switch to D-tiling with a flash-style online
    # softmax (running max/denominator + accumulator rescale) instead of forcing 8 rows.
    return int(min(B, 8))


def attention_pooling(x, w1, b1, w2, b2, *, batch_tile=None, compute_dtype=None,
                      min_grid_steps=2):
    """x: [B, D, F]; w1: [F, H]; b1: [H]; w2: [H, 1]; b2: [1] -> out [B, F].

    compute_dtype=jnp.bfloat16 streams x (and w1) as bf16 in HBM for ~2x bandwidth;
    accumulation stays f32 (expect ~1e-2 relative error vs the f32 reference).
    F should be a multiple of 128 for lane-dense (unmasked) output stores.
    """
    B, D, F = x.shape
    H = w1.shape[1]
    out_dtype = x.dtype

    # Hoist casts out of the kernel: the dominant x stream (and the resident w1 weight)
    # are cast once here, never per grid step.
    if compute_dtype is not None:
        x = x.astype(compute_dtype)
        w1 = w1.astype(compute_dtype)

    block_budget, vmem_limit = _vmem_plan()

    if batch_tile is None:
        batch_tile = _pick_batch_tile(
            B, D, F, x.dtype.itemsize,
            block_budget_bytes=block_budget, min_grid_steps=min_grid_steps)
    tb = int(batch_tile)
    grid_b = pl.cdiv(B, tb)   # partial last tile OK: rows are independent; OOB output
                              # rows are masked on store.

    b1_2d = b1.reshape(1, H).astype(jnp.float32)
    w2_row = w2.reshape(1, H).astype(jnp.float32)   # (H,1) -> (1,H): lane reduction
    b2_1d = b2.reshape(1).astype(jnp.float32)       # scalar bias in SMEM

    cost = pl.CostEstimate(
        flops=2 * B * D * F * H + 4 * B * D * H + 4 * B * D * F,
        transcendentals=B * D + B,
        bytes_accessed=(x.size * x.dtype.itemsize
                        + B * F * jnp.dtype(out_dtype).itemsize
                        + F * H * jnp.dtype(w1.dtype).itemsize
                        + (2 * H + 1) * 4),
    )

    return pl.pallas_call(
        _attn_pool_kernel,
        out_shape=jax.ShapeDtypeStruct((B, F), out_dtype),
        grid_spec=pltpu.PrefetchScalarGridSpec(
            num_scalar_prefetch=0,
            grid=(grid_b,),
            in_specs=[
                pl.BlockSpec((tb, D, F), lambda b: (b, 0, 0)),   # x, TB batches per step
                pl.BlockSpec((F, H), lambda b: (0, 0)),          # w1 (resident)
                pl.BlockSpec((1, H), lambda b: (0, 0)),          # b1 (resident)
                pl.BlockSpec((1, H), lambda b: (0, 0)),          # w2 as a row (resident)
                pl.BlockSpec(memory_space=pltpu.MemorySpace.SMEM),  # b2 scalar in SMEM
            ],
            out_specs=pl.BlockSpec((tb, F), lambda b: (b, 0)),
        ),
        compiler_params=pltpu.CompilerParams(
            dimension_semantics=("parallel",),
            vmem_limit_bytes=vmem_limit,
        ),
        cost_estimate=cost,
    )(x, w1, b1_2d, w2_row, b2_1d)


def attention_pooling_ref(x, w1, b1, w2, b2):
    """Pure-JAX reference mirroring the PyTorch forward."""
    s = jnp.maximum(x @ w1 + b1, 0.0) @ w2 + b2   # (B, D, 1)
    a = jax.nn.softmax(s, axis=1)                 # softmax over D
    return jnp.sum(x * a, axis=1)                 # (B, F)


if __name__ == "__main__":
    B, D, F = 16, 8, 128      # small but lane/sublane-friendly shapes
    H = F // 2                # hidden_features default = in_features // 2

    key = jax.random.PRNGKey(0)
    kx, kw1, kb1, kw2, kb2 = jax.random.split(key, 5)

    x = jax.random.normal(kx, (B, D, F), dtype=jnp.float32)
    w1 = jax.random.normal(kw1, (F, H), dtype=jnp.float32) * 0.1
    b1 = jax.random.normal(kb1, (H,), dtype=jnp.float32) * 0.1
    w2 = jax.random.normal(kw2, (H, 1), dtype=jnp.float32) * 0.1
    b2 = jax.random.normal(kb2, (1,), dtype=jnp.float32) * 0.1

    ref = attention_pooling_ref(x, w1, b1, w2, b2)

    # Default heuristic: TB=8 (8-sublane aligned) -> 2 grid steps, both v7x TCs busy.
    out = jax.block_until_ready(attention_pooling(x, w1, b1, w2, b2))
    assert out.shape == (B, F)
    assert jnp.allclose(out, ref, atol=1e-5, rtol=1e-5), "mismatch vs reference (default)"

    # Partial final batch tile (B % TB != 0): padded garbage rows stay confined to
    # masked output rows.
    B2 = 20
    x2 = jax.random.normal(kx, (B2, D, F), dtype=jnp.float32)
    ref2 = attention_pooling_ref(x2, w1, b1, w2, b2)
    out2 = jax.block_until_ready(attention_pooling(x2, w1, b1, w2, b2, batch_tile=8))
    assert out2.shape == (B2, F)
    assert jnp.allclose(out2, ref2, atol=1e-5, rtol=1e-5), "mismatch vs reference (partial tile)"

    # bf16-streamed x: halves the dominant HBM stream; bf16 matmul carries its own
    # (looser) tolerance vs the f32 reference.
    out_bf16 = jax.block_until_ready(
        attention_pooling(x, w1, b1, w2, b2, compute_dtype=jnp.bfloat16))
    assert jnp.allclose(out_bf16, ref, atol=1e-1, rtol=5e-2), "mismatch vs reference (bf16)"

    print("KERNEL_OK")
</pallas_src>

<mosaic_0001>
module attributes {stable_mosaic.version = 11 : i64} {
  func.func @_attn_pool_kernel(%arg0: i32, %arg1: memref<8x8x128xf32, #tpu.memory_space<vmem>>, %arg2: memref<128x64xf32, #tpu.memory_space<vmem>>, %arg3: memref<1x64xf32, #tpu.memory_space<vmem>>, %arg4: memref<1x64xf32, #tpu.memory_space<vmem>>, %arg5: memref<1xf32, #tpu.memory_space<smem>>, %arg6: memref<8x128xf32, #tpu.memory_space<vmem>>) attributes {dimension_semantics = [#tpu.dimension_semantics<parallel>], iteration_bounds = array<i64: 2>, scalar_prefetch = 0 : i64, scratch_operands = 0 : i64, tpu.core_type = #tpu.core_type<tc>, window_params = [{transform_indices = @transform_0, window_bounds = array<i64: 8, 8, 128>}, {pipeline_mode = #tpu.pipeline_mode<synchronous>, transform_indices = @transform_1, window_bounds = array<i64: 128, 64>}, {pipeline_mode = #tpu.pipeline_mode<synchronous>, transform_indices = @transform_2, window_bounds = array<i64: 1, 64>}, {pipeline_mode = #tpu.pipeline_mode<synchronous>, transform_indices = @transform_3, window_bounds = array<i64: 1, 64>}, {transform_indices = @transform_4, window_bounds = array<i64: 1>}, {transform_indices = @transform_5, window_bounds = array<i64: 8, 128>}]} {
    %c0 = arith.constant 0 : index
    %c0_0 = arith.constant 0 : index
    %c0_1 = arith.constant 0 : index
    %0 = vector.load %arg1[%c0, %c0_0, %c0_1] : memref<8x8x128xf32, #tpu.memory_space<vmem>>, vector<8x8x128xf32>
    %1 = vector.shape_cast %0 : vector<8x8x128xf32> to vector<64x128xf32>
    %c0_2 = arith.constant 0 : index
    %c0_3 = arith.constant 0 : index
    %2 = vector.load %arg2[%c0_2, %c0_3] : memref<128x64xf32, #tpu.memory_space<vmem>>, vector<128x64xf32>
    %cst = arith.constant dense<0.000000e+00> : vector<64x64xf32>
    %3 = tpu.matmul %1, %2, %cst {dimension_numbers = #tpu.dot_dimension_numbers<[1], [0], [0], [1], [0, 0, 1, 1], [], []>} : vector<64x128xf32>, vector<128x64xf32>, vector<64x64xf32> -> vector<64x64xf32>
    %c0_4 = arith.constant 0 : index
    %c0_5 = arith.constant 0 : index
    %4 = vector.load %arg3[%c0_4, %c0_5] : memref<1x64xf32, #tpu.memory_space<vmem>>, vector<1x64xf32>
    %5 = vector.broadcast %4 : vector<1x64xf32> to vector<64x64xf32>
    %6 = arith.addf %3, %5 : vector<64x64xf32>
    %cst_6 = arith.constant 0.000000e+00 : f32
    %7 = vector.broadcast %cst_6 : f32 to vector<64x64xf32>
    %8 = arith.maximumf %6, %7 : vector<64x64xf32>
    %9 = vector.shape_cast %8 : vector<64x64xf32> to vector<8x8x64xf32>
    %c0_7 = arith.constant 0 : index
    %c0_8 = arith.constant 0 : index
    %10 = vector.load %arg4[%c0_7, %c0_8] : memref<1x64xf32, #tpu.memory_space<vmem>>, vector<1x64xf32>
    %11 = vector.shape_cast %10 : vector<1x64xf32> to vector<1x1x64xf32>
    %12 = vector.broadcast %11 : vector<1x1x64xf32> to vector<8x8x64xf32>
    %13 = arith.mulf %9, %12 : vector<8x8x64xf32>
    %cst_9 = arith.constant dense<0.000000e+00> : vector<8x8xf32>
    %14 = vector.multi_reduction <add>, %13, %cst_9 [2] : vector<8x8x64xf32> to vector<8x8xf32>
    %15 = vector.shape_cast %14 : vector<8x8xf32> to vector<8x8x1xf32>
    %c0_10 = arith.constant 0 : index
    %16 = memref.load %arg5[%c0_10] : memref<1xf32, #tpu.memory_space<smem>>
    %17 = vector.broadcast %16 : f32 to vector<8x8x1xf32>
    %18 = arith.addf %15, %17 : vector<8x8x1xf32>
    %cst_11 = arith.constant dense<0xFF800000> : vector<8x1xf32>
    %19 = vector.multi_reduction <maximumf>, %18, %cst_11 [1] : vector<8x8x1xf32> to vector<8x1xf32>
    %20 = vector.shape_cast %19 : vector<8x1xf32> to vector<8x1x1xf32>
    %21 = vector.broadcast %20 : vector<8x1x1xf32> to vector<8x8x1xf32>
    %22 = arith.subf %18, %21 : vector<8x8x1xf32>
    %23 = math.exp %22 : vector<8x8x1xf32>
    %cst_12 = arith.constant dense<0.000000e+00> : vector<8x1xf32>
    %24 = vector.multi_reduction <add>, %23, %cst_12 [1] : vector<8x8x1xf32> to vector<8x1xf32>
    %25 = vector.shape_cast %24 : vector<8x1xf32> to vector<8x1x1xf32>
    %26 = tpu.reciprocal %25 {approx = true} : vector<8x1x1xf32> -> vector<8x1x1xf32>
    %27 = arith.mulf %25, %26 : vector<8x1x1xf32>
    %cst_13 = arith.constant 2.000000e+00 : f32
    %28 = vector.broadcast %cst_13 : f32 to vector<8x1x1xf32>
    %29 = arith.subf %28, %27 : vector<8x1x1xf32>
    %30 = arith.mulf %26, %29 : vector<8x1x1xf32>
    %31 = vector.broadcast %30 : vector<8x1x1xf32> to vector<8x8x1xf32>
    %32 = arith.mulf %23, %31 : vector<8x8x1xf32>
    %33 = vector.broadcast %32 : vector<8x8x1xf32> to vector<8x8x128xf32>
    %34 = arith.mulf %0, %33 : vector<8x8x128xf32>
    %cst_14 = arith.constant dense<0.000000e+00> : vector<8x128xf32>
    %35 = vector.multi_reduction <add>, %34, %cst_14 [1] : vector<8x8x128xf32> to vector<8x128xf32>
    %c0_15 = arith.constant 0 : index
    %c0_16 = arith.constant 0 : index
    %36 = vector.load %arg6[%c0_15, %c0_16] : memref<8x128xf32, #tpu.memory_space<vmem>>, vector<8x128xf32>
    tpu.vector_store %arg6[%c0_15, %c0_16], %35 {strides = array<i32>} : memref<8x128xf32, #tpu.memory_space<vmem>>, vector<8x128xf32>,
    return
  }
  func.func @transform_0(%arg0: i32) -> (i32, i32, i32) {
    %c0_i32 = arith.constant 0 : i32
    %c0_i32_0 = arith.constant 0 : i32
    %c0_i32_1 = arith.constant 0 : i32
    return %arg0, %c0_i32, %c0_i32_0 : i32, i32, i32
  }
  func.func @transform_1(%arg0: i32) -> (i32, i32) {
    %c0_i32 = arith.constant 0 : i32
    %c0_i32_0 = arith.constant 0 : i32
    %c0_i32_1 = arith.constant 0 : i32
    return %c0_i32, %c0_i32_0 : i32, i32
  }
  func.func @transform_2(%arg0: i32) -> (i32, i32) {
    %c0_i32 = arith.constant 0 : i32
    %c0_i32_0 = arith.constant 0 : i32
    %c0_i32_1 = arith.constant 0 : i32
    return %c0_i32, %c0_i32_0 : i32, i32
  }
  func.func @transform_3(%arg0: i32) -> (i32, i32) {
    %c0_i32 = arith.constant 0 : i32
    %c0_i32_0 = arith.constant 0 : i32
    %c0_i32_1 = arith.constant 0 : i32
    return %c0_i32, %c0_i32_0 : i32, i32
  }
  func.func @transform_4(%arg0: i32) -> i32 {
    %c0_i32 = arith.constant 0 : i32
    %c0_i32_0 = arith.constant 0 : i32
    return %c0_i32 : i32
  }
  func.func @transform_5(%arg0: i32) -> (i32, i32) {
    %c0_i32 = arith.constant 0 : i32
    %c0_i32_0 = arith.constant 0 : i32
    return %arg0, %c0_i32 : i32, i32
  }
}

</mosaic_0001>

<bundles_post_ra>
// kernel: tpu_custom_call.1
= control target key start
LH: loop header
LB: loop body
LE: loop exit
PB: predicated region body
PF: predicated region fallthrough
CT: control target
= control target key end

     0   :  { %s1123_s0 = inlined_call_operand.vmem [shape: f32[16,8,128], index: 0, kind: input, shape index: {}]   ;;  %s1124_s1 = inlined_call_operand.vmem [shape: f32[128,64], index: 1, kind: input, shape index: {}]   ;;  %s1125_s2 = inlined_call_operand.vmem [shape: f32[1,64], index: 2, kind: input, shape index: {}]   ;;  %s1126_s3 = inlined_call_operand.vmem [shape: f32[1,64], index: 3, kind: input, shape index: {}]   ;;  %s1127_s4 = inlined_call_operand.<no memory space> [shape: f32[1], index: 4, kind: input, shape index: {}]   ;;  %s1128_s5 = inlined_call_operand.hbm [shape: f32[16,128], index: 5, kind: output, shape index: {}]  }
   0x1   :  { %10 = sst [smem:[#allocation2]] %s1127_s4 }
   0x2   :  { %11 = vsyncpa [#allocation4], 0 }
   0x3   :  { %13 = vsyncpa [#allocation4 + $0x1], 0  ;;  %s894_s20 = smov 0   ;;  %s896_s21 = smov 0  }
   0x4   :  { %s898_s22 = smov 0   ;;  %s900_s23 = smov 0  }
   0x5 LB: > { %s664_s4 = sadd.s32 4294967295, %s859_s23   ;;  %s665_s24 = sadd.s32 4294967294, %s859_s23   ;;  %s859_s23 = sphi %s900_s23, %s1134_s23   ;;  %s855_s22 = sphi %s898_s22, %s1133_s22   ;;  %s851_s21 = sphi %s896_s21, %s1132_s21   ;;  %s847_s20 = sphi %s894_s20, %s1131_s20  }
   0x6   : > { %s917_s25 = sadd.s32 1, %s859_s23   ;;  %s136_s26 = sadd.s32 1, %s855_s22 }
   0x7   : > { %s133_s27 = ssub.s32 %s859_s23, %s917_s25  ;;  %p146_p0 = scmp.ne.s32.totalorder %s855_s22, %s851_s21 }
   0x8   : > { %p134_p1 = scmp.eq.s32.totalorder %s133_s27, 0  ;;  %p147_p2 = scmp.eq.s32.totalorder %s664_s4, 1 }
   0x9   : > { %p152_p3 = scmp.ne.s32.totalorder %s851_s21, %s847_s20  ;;  %p153_p4 = scmp.eq.s32.totalorder %s665_s24, 1 }
   0xa   : > { %s929_s28 = scalar_select %p134_p1, %s855_s22, %s136_s26  }
   0xb   : > { %p931_p5 = por %p147_p2, %p146_p0  ;;  %p935_p6 = por %p153_p4, %p152_p3 }
   0xc   : > { %p668_p7 = scmp.ge.s32.totalorder %s859_s23, 1  ;;  %p192_p8 = scmp.lt.s32.totalorder %s859_s23, 3 }
   0xe   : > { %p193_p9 = pnand %p668_p7, %p192_p8 }
   0xf   : > { %s967_s27 = sshll.u32 (!%p193_p9), %s664_s4, 3  ;;  %s340_s13 = sld [smem:[#allocation2]] (!%p193_p9) }
  0x10   : > { %196 = sbr.rel (%p193_p9) target bundleno = 391 (0x187), region = 40  ;;  %p221_p10 = scmp.lt.s32.totalorder (!%p193_p9), %s967_s27, 15 }
  0x11   : > { %s217_s14 = sand.u32 (!%p193_p9), 1, %s851_s21   ;;  %s601_s18 = scalar_lea.hbm (!%p193_p9), %s1128_s5, %s967_s27 }
  0x12   : > { %s1087_s15 = sshll.u32 (!%p193_p9), %s217_s14, 3  ;;  %s605_s26 = sshll.u32 (!%p193_p9), %s601_s18, 4  ;;  %s606_s26 = int_to_ptr.hbm [resolvable:$true] %s605_s26 }
  0x13   : > { %s219_s19 = scalar_lea.vmem (!%p193_p9), [#allocation3], %s1087_s15  ;;  %s811_s6 = sshra.s32 (!%p193_p9), %s606_s26, 4  ;;  %s812_s6 = int_to_ptr.hbm [resolvable:$true] %s811_s6 }
  0x14   : > { %s603_s24 = sshll.u32 (!%p193_p9), %s219_s19, 4  ;;  %s817_s4 = scalar_lea.hbm (!%p193_p9), %s1128_s5, 16  ;;  %s604_s24 = int_to_ptr.vmem [resolvable:$true] %s603_s24 }
  0x15   : > { %v249_v0 = vld [vmem:[%s1124_s1 + $0x78] sm:$0xff]  ;;  %v248_v1 = vld [vmem:[%s1124_s1 + $0x70] sm:$0xff]  ;;  %v247_v2 = vld [vmem:[%s1124_s1 + $0x68] sm:$0xff]  ;;  %s222_s11 = scalar_select %p221_p10, %s967_s27, 15  ;;  %vm315_vm0 = vcmask 523264   ;;  %vm574_vm1 = vcmask 1041409  }
  0x16   : > { %254 = vmatpush.msra.mxu0 %v249_v0  ;;  %676 = vmatpush.msra.mxu1 %v249_v0  ;;  %v246_v3 = vld [vmem:[%s1124_s1 + $0x60] sm:$0xff]  ;;  %v245_v4 = vld [vmem:[%s1124_s1 + $0x58] sm:$0xff]  ;;  %v244_v5 = vld [vmem:[%s1124_s1 + $0x50] sm:$0xff]  ;;  %vm576_vm2 = vcmask 1042434   ;;  %vm578_vm3 = vcmask 1043459   ;;  %vm580_vm4 = vcmask 1044484   ;;  %p818_p0 = scmp.lt.s32.totalorder %s812_s6, %s1128_s5 }
  0x17   : > { %677 = vmatpush.msra.mxu2 %v249_v0  ;;  %678 = vmatpush.msra.mxu3 %v249_v0  ;;  %v243_v6 = vld [vmem:[%s1124_s1 + $0x48] sm:$0xff]  ;;  %v242_v7 = vld [vmem:[%s1124_s1 + $0x40] sm:$0xff]  ;;  %v241_v8 = vld [vmem:[%s1124_s1 + $0x38] sm:$0xff]  ;;  %s671_s16 = sshll.u32 %s222_s11, 3  ;;  %vm582_vm5 = vcmask 1045509   ;;  %vm584_vm6 = vcmask 1046534  }
  0x18   : > { %255 = vmatpush.msra.mxu0 %v248_v1  ;;  %679 = vmatpush.msra.mxu1 %v248_v1  ;;  %v240_v9 = vld [vmem:[%s1124_s1 + $0x30] sm:$0xff]  ;;  %v239_v10 = vld [vmem:[%s1124_s1 + $0x28] sm:$0xff]  ;;  %v238_v11 = vld [vmem:[%s1124_s1 + $0x20] sm:$0xff]  ;;  %s224_s7 = scalar_lea.vmem %s1123_s0, %s671_s16  ;;  %vm586_vm7 = vcmask 1047559   ;;  %s591_s27 = scalar_lea.sflag [#allocation4], %s217_s14 }
  0x19   : > { %680 = vmatpush.msra.mxu2 %v248_v1  ;;  %681 = vmatpush.msra.mxu3 %v248_v1  ;;  %v237_v12 = vld [vmem:[%s1124_s1 + $0x18] sm:$0xff]  ;;  %v236_v13 = vld [vmem:[%s1124_s1 + $0x10] sm:$0xff]  ;;  %v235_v14 = vld [vmem:[%s1124_s1 + $0x8] sm:$0xff] }
  0x1a   : > { %256 = vmatpush.msra.mxu0 %v247_v2  ;;  %682 = vmatpush.msra.mxu1 %v247_v2  ;;  %v234_v15 = vld [vmem:[%s1124_s1] sm:$0xff]  ;;  %v1000_v17 = vld [vmem:[%s224_s7 + $0x10] sm:$0xff]  ;;  %v1010_v20 = vld [vmem:[%s224_s7 + $0x8] sm:$0xff] }
  0x1b   : > { %683 = vmatpush.msra.mxu2 %v247_v2  ;;  %684 = vmatpush.msra.mxu3 %v247_v2  ;;  %v998_v16 = vld [vmem:[%s224_s7] sm:$0xff]  ;;  %v1005_v19 = vld [vmem:[%s224_s7 + $0x30] sm:$0xff]  ;;  %v1012_v21 = vld [vmem:[%s224_s7 + $0x18] sm:$0xff]  ;;  %v341_v2 = vstv %s340_s13 }
  0x1c   : > { %257 = vmatpush.msra.mxu0 %v246_v3  ;;  %685 = vmatpush.msra.mxu1 %v246_v3  ;;  %v1002_v18 = vld [vmem:[%s224_s7 + $0x20] sm:$0xff]  ;;  %v1014_v22 = vld [vmem:[%s224_s7 + $0x28] sm:$0xff]  ;;  %v1017_v23 = vld [vmem:[%s224_s7 + $0x38] sm:$0xff]  ;;  %s813_s7 = scalar_lea.hbm %s812_s6, 8 }
  0x1d   : > { %686 = vmatpush.msra.mxu2 %v246_v3  ;;  %687 = vmatpush.msra.mxu3 %v246_v3  ;;  %v763_v24 = vld [vmem:[%s1125_s2] ss:$0 sm:$0xff]  ;;  %p814_p11 = scmp.ne.s32.totalorder %s812_s6, %s813_s7  ;;  %p819_p1 = scmp.lt.s32.totalorder %s817_s4, %s813_s7 }
  0x1e   : > { %258 = vmatpush.msra.mxu0 %v245_v4  ;;  %688 = vmatpush.msra.mxu1 %v245_v4  ;;  %v764_v28 = vld [vmem:[%s1126_s3] ss:$0 sm:$0xff] }
  0x1f   : > { %689 = vmatpush.msra.mxu2 %v245_v4  ;;  %690 = vmatpush.msra.mxu3 %v245_v4  ;;  %p815_p12 = pnand %p814_p11, %p931_p5  ;;  %p820_p2 = por %p819_p1, %p818_p0 }
  0x20   : > { %259 = vmatpush.msra.mxu0 %v244_v5  ;;  %691 = vmatpush.msra.mxu1 %v244_v5 }
  0x21   : > { %692 = vmatpush.msra.mxu2 %v244_v5  ;;  %693 = vmatpush.msra.mxu3 %v244_v5  ;;  %p816_p13 = pneg %p815_p12 }
  0x22   : > { %260 = vmatpush.msra.mxu0 %v243_v6  ;;  %694 = vmatpush.msra.mxu1 %v243_v6 }
  0x23   : > { %695 = vmatpush.msra.mxu2 %v243_v6  ;;  %696 = vmatpush.msra.mxu3 %v243_v6  ;;  %p821_p3 = pnand %p820_p2, %p816_p13 }
  0x24   : > { %261 = vmatpush.msra.mxu0 %v242_v7  ;;  %697 = vmatpush.msra.mxu1 %v242_v7 }
  0x25   : > { %698 = vmatpush.msra.mxu2 %v242_v7  ;;  %699 = vmatpush.msra.mxu3 %v242_v7 }
  0x26   : > { %262 = vmatpush.msra.mxu0 %v241_v8  ;;  %700 = vmatpush.msra.mxu1 %v241_v8 }
  0x27   : > { %701 = vmatpush.msra.mxu2 %v241_v8  ;;  %702 = vmatpush.msra.mxu3 %v241_v8 }
  0x28   : > { %263 = vmatpush.msra.mxu0 %v240_v9  ;;  %703 = vmatpush.msra.mxu1 %v240_v9 }
  0x29   : > { %704 = vmatpush.msra.mxu2 %v240_v9  ;;  %705 = vmatpush.msra.mxu3 %v240_v9 }
  0x2a   : > { %264 = vmatpush.msra.mxu0 %v239_v10  ;;  %706 = vmatpush.msra.mxu1 %v239_v10 }
  0x2b   : > { %707 = vmatpush.msra.mxu2 %v239_v10  ;;  %708 = vmatpush.msra.mxu3 %v239_v10 }
  0x2c   : > { %265 = vmatpush.msra.mxu0 %v238_v11  ;;  %709 = vmatpush.msra.mxu1 %v238_v11 }
  0x2d   : > { %710 = vmatpush.msra.mxu2 %v238_v11  ;;  %711 = vmatpush.msra.mxu3 %v238_v11 }
  0x2e   : > { %266 = vmatpush.msra.mxu0 %v237_v12  ;;  %712 = vmatpush.msra.mxu1 %v237_v12 }
  0x2f   : > { %713 = vmatpush.msra.mxu2 %v237_v12  ;;  %714 = vmatpush.msra.mxu3 %v237_v12 }
  0x30   : > { %267 = vmatpush.msra.mxu0 %v236_v13  ;;  %715 = vmatpush.msra.mxu1 %v236_v13 }
  0x31   : > { %716 = vmatpush.msra.mxu2 %v236_v13  ;;  %717 = vmatpush.msra.mxu3 %v236_v13 }
  0x32   : > { %268 = vmatpush.msra.mxu0 %v235_v14  ;;  %718 = vmatpush.msra.mxu1 %v235_v14 }
  0x33   : > { %719 = vmatpush.msra.mxu2 %v235_v14  ;;  %720 = vmatpush.msra.mxu3 %v235_v14 }
  0x34   : > { %269 = vmatpush.msra.mxu0 %v234_v15  ;;  %721 = vmatpush.msra.mxu1 %v234_v15 }
  0x35   : > { %722 = vmatpush.msra.mxu2 %v234_v15  ;;  %270 = vmatmul.f32.vlgmr.msra.gmra.mxu0 %v998_v16 }
  0x36   : > { %276 = vmatmul.f32.vlgmr.msra.gmra.mxu1 %v1000_v17  ;;  %282 = vmatmul.f32.vlgmr.msra.gmra.mxu2 %v1002_v18 }
  0x37   : > { %723 = vmatpush.msra.mxu3 %v234_v15 }
  0x38   : > { %288 = vmatmul.f32.vlgmr.msra.gmra.mxu3 %v1005_v19 }
  0x3d   : > { %273 = vmatmul.f32.gmra.mxu0 %v1010_v20 }
  0x3e   : > { %279 = vmatmul.f32.gmra.mxu1 %v1012_v21  ;;  %285 = vmatmul.f32.gmra.mxu2 %v1014_v22 }
  0x40   : > { %291 = vmatmul.f32.gmra.mxu3 %v1017_v23 }
  0xb2   : > { %v271_v25 = vpop.f32.mrf.mxu0 }
  0xb3   : > { %v272_v26 = vadd.f32 %v763_v24, %v271_v25  ;;  %v277_v27 = vpop.f32.mrf.mxu1 }
  0xb4   : > { %v278_v29 = vadd.f32 %v763_v24, %v277_v27 }
  0xb5   : > { %v295_v30 = vmax.f32 %v272_v26, 0.0 }
  0xb6   : > { %v297_v31 = vmax.f32 %v278_v29, 0.0 }
  0xb7   : > { %v307_v32 = vmul.f32 %v764_v28, %v295_v30 }
  0xb8   : > { %v309_v33 = vmul.f32 %v764_v28, %v297_v31 }
  0xb9   : > { %v283_v34 = vpop.f32.mrf.mxu2  ;;  %v316_v35 = vsel %vm315_vm0, %v307_v32, 0.0 }
  0xba   : > { %v284_v36 = vadd.f32 %v763_v24, %v283_v34  ;;  %v322_v37 = vsel %vm315_vm0, %v309_v33, 0.0  ;;  %v274_v38 = vpop.f32.mrf.mxu0  ;;  %317 = vadd.xlane.f32.xlu0 %v316_v35 }
  0xbb   : > { %v280_v39 = vpop.f32.mrf.mxu1  ;;  %v289_v40 = vpop.f32.mrf.mxu3  ;;  %323 = vadd.xlane.f32.xlu1 %v322_v37  ;;  %v275_v41 = vadd.f32 %v763_v24, %v274_v38 }
  0xbc   : > { %v299_v42 = vmax.f32 %v284_v36, 0.0  ;;  %v281_v43 = vadd.f32 %v763_v24, %v280_v39  ;;  %v290_v44 = vadd.f32 %v763_v24, %v289_v40 }
  0xbd   : > { %v296_v45 = vmax.f32 %v275_v41, 0.0 }
  0xbe   : > { %v298_v46 = vmax.f32 %v281_v43, 0.0  ;;  %v311_v47 = vmul.f32 %v764_v28, %v299_v42  ;;  %v301_v51 = vmax.f32 %v290_v44, 0.0 }
  0xbf   : > { %v308_v48 = vmul.f32 %v764_v28, %v296_v45 }
  0xc0   : > { %v328_v49 = vsel %vm315_vm0, %v311_v47, 0.0  ;;  %v310_v50 = vmul.f32 %v764_v28, %v298_v46  ;;  %v313_v59 = vmul.f32 %v764_v28, %v301_v51 }
  0xc1   : > { %v286_v52 = vpop.f32.mrf.mxu2  ;;  %329 = vadd.xlane.f32.xlu2 %v328_v49  ;;  %v319_v53 = vsel %vm315_vm0, %v308_v48, 0.0 }
  0xc2   : > { %v287_v54 = vadd.f32 %v763_v24, %v286_v52  ;;  %v325_v55 = vsel %vm315_vm0, %v310_v50, 0.0  ;;  %320 = vadd.xlane.f32.xlu0 %v319_v53  ;;  %v334_v0 = vsel %vm315_vm0, %v313_v59, 0.0 }
  0xc3   : > { %v292_v56 = vpop.f32.mrf.mxu3  ;;  %326 = vadd.xlane.f32.xlu1 %v325_v55 }
  0xc4   : > { %v300_v57 = vmax.f32 %v287_v54, 0.0  ;;  %v293_v58 = vadd.f32 %v763_v24, %v292_v56 }
  0xc6   : > { %v302_v60 = vmax.f32 %v293_v58, 0.0  ;;  %v312_v61 = vmul.f32 %v764_v28, %v300_v57 }
  0xc8   : > { %v331_v62 = vsel %vm315_vm0, %v312_v61, 0.0  ;;  %v314_v63 = vmul.f32 %v764_v28, %v302_v60 }
  0xc9   : > { %332 = vadd.xlane.f32.xlu2 %v331_v62 }
  0xca   : > { %v337_v1 = vsel %vm315_vm0, %v314_v63, 0.0  ;;  %335 = vadd.xlane.f32.xlu0 %v334_v0 }
  0xcb   : > { %338 = vadd.xlane.f32.xlu1 %v337_v1 }
 0x12d   : > { %v318_v3 = vpop.xlane.xlu0 %317 }
 0x12e   : > { %v324_v4 = vpop.xlane.xlu1 %323  ;;  %v342_v5 = vadd.f32 %v341_v2, %v318_v3 }
 0x12f   : > { %v344_v6 = vadd.f32 %v341_v2, %v324_v4 }
 0x130   : > { %v350_v7 = vrot.slane %v342_v5, 4 }
 0x131   : > { %v362_v8 = vrot.slane %v344_v6, 4 }
 0x132   : > { %v351_v9 = vmax.f32 %v342_v5, %v350_v7 }
 0x133   : > { %v363_v10 = vmax.f32 %v344_v6, %v362_v8 }
 0x134   : > { %v352_v11 = vrot.slane %v351_v9, 2  ;;  %v330_v12 = vpop.xlane.xlu2 %329 }
 0x135   : > { %v364_v13 = vrot.slane %v363_v10, 2  ;;  %v346_v14 = vadd.f32 %v341_v2, %v330_v12  ;;  %v321_v15 = vpop.xlane.xlu0 %320 }
 0x136   : > { %v353_v24 = vmax.f32 %v351_v9, %v352_v11  ;;  %v327_v25 = vpop.xlane.xlu1 %326  ;;  %v343_v26 = vadd.f32 %v341_v2, %v321_v15 }
 0x137   : > { %v365_v27 = vmax.f32 %v363_v10, %v364_v13  ;;  %v374_v28 = vrot.slane %v346_v14, 4  ;;  %v345_v29 = vadd.f32 %v341_v2, %v327_v25 }
 0x138   : > { %v354_v30 = vrot.slane %v353_v24, 1  ;;  %v356_v31 = vrot.slane %v343_v26, 4 }
 0x139   : > { %v366_v32 = vrot.slane %v365_v27, 1  ;;  %v375_v33 = vmax.f32 %v346_v14, %v374_v28  ;;  %v368_v34 = vrot.slane %v345_v29, 4 }
 0x13a   : > { %v355_v35 = vmax.f32 %v353_v24, %v354_v30  ;;  %v357_v36 = vmax.f32 %v343_v26, %v356_v31 }
 0x13b   : > { %v367_v37 = vmax.f32 %v365_v27, %v366_v32  ;;  %v376_v38 = vrot.slane %v375_v33, 2  ;;  %v369_v39 = vmax.f32 %v345_v29, %v368_v34 }
 0x13c   : > { %v398_v40 = vsub.f32 %v342_v5, %v355_v35  ;;  %v358_v41 = vrot.slane %v357_v36, 2  ;;  %v333_v42 = vpop.xlane.xlu2 %332 }
 0x13d   : > { %v400_v43 = vsub.f32 %v344_v6, %v367_v37  ;;  %v377_v44 = vmax.f32 %v375_v33, %v376_v38  ;;  %v370_v45 = vrot.slane %v369_v39, 2  ;;  %v347_v46 = vadd.f32 %v341_v2, %v333_v42  ;;  %v336_v47 = vpop.xlane.xlu0 %335 }
 0x13e   : > { %v406_v48 = vmul.f32 1.442695, %v398_v40  ;;  %v359_v49 = vmax.f32 %v357_v36, %v358_v41  ;;  %v339_v50 = vpop.xlane.xlu1 %338  ;;  %v348_v51 = vadd.f32 %v341_v2, %v336_v47 }
 0x13f   : > { %v410_v52 = vmul.f32 1.442695, %v400_v43  ;;  %v378_v53 = vrot.slane %v377_v44, 1  ;;  %v371_v54 = vmax.f32 %v369_v39, %v370_v45  ;;  %v380_v55 = vrot.slane %v347_v46, 4 }
 0x140   : > { %765 = vpow2.f32 %v406_v48  ;;  %v360_v56 = vrot.slane %v359_v49, 1  ;;  %v349_v57 = vadd.f32 %v341_v2, %v339_v50  ;;  %v386_v58 = vrot.slane %v348_v51, 4 }
 0x141   : > { %767 = vpow2.f32 %v410_v52  ;;  %v379_v59 = vmax.f32 %v377_v44, %v378_v53  ;;  %v372_v60 = vrot.slane %v371_v54, 1  ;;  %v381_v61 = vmax.f32 %v347_v46, %v380_v55 }
 0x142   : > { %v361_v62 = vmax.f32 %v359_v49, %v360_v56  ;;  %v392_v63 = vrot.slane %v349_v57, 4  ;;  %v387_v0 = vmax.f32 %v348_v51, %v386_v58 }
 0x143   : > { %v402_v1 = vsub.f32 %v346_v14, %v379_v59  ;;  %v373_v3 = vmax.f32 %v371_v54, %v372_v60  ;;  %v382_v4 = vrot.slane %v381_v61, 2 }
 0x144   : > { %v399_v5 = vsub.f32 %v343_v26, %v361_v62  ;;  %v393_v6 = vmax.f32 %v349_v57, %v392_v63  ;;  %v388_v7 = vrot.slane %v387_v0, 2 }
 0x145   : > { %v414_v8 = vmul.f32 1.442695, %v402_v1  ;;  %v401_v9 = vsub.f32 %v345_v29, %v373_v3  ;;  %v383_v10 = vmax.f32 %v381_v61, %v382_v4 }
 0x146   : > { %v1036_v11 = vpop.eup %765  ;;  %v408_v2 = vmul.f32 1.442695, %v399_v5  ;;  %v394_v12 = vrot.slane %v393_v6, 2  ;;  %v389_v13 = vmax.f32 %v387_v0, %v388_v7 }
 0x147   : > { %v1038_v15 = vpop.eup %767  ;;  %v422_v24 = vrot.slane %v1036_v11, 4  ;;  %769 = vpow2.f32 %v414_v8  ;;  %v412_v25 = vmul.f32 1.442695, %v401_v9  ;;  %v384_v14 = vrot.slane %v383_v10, 1 }
 0x148   : > { %v434_v27 = vrot.slane %v1038_v15, 4  ;;  %771 = vpow2.f32 %v408_v2  ;;  %v395_v26 = vmax.f32 %v393_v6, %v394_v12  ;;  %v390_v28 = vrot.slane %v389_v13, 1 }
 0x149   : > { %v423_v29 = vadd.f32 %v1036_v11, %v422_v24  ;;  %773 = vpow2.f32 %v412_v25  ;;  %v385_v30 = vmax.f32 %v383_v10, %v384_v14 }
 0x14a   : > { %v435_v31 = vadd.f32 %v1038_v15, %v434_v27  ;;  %v396_v32 = vrot.slane %v395_v26, 1  ;;  %v391_v33 = vmax.f32 %v389_v13, %v390_v28 }
 0x14b   : > { %v424_v34 = vrot.slane %v423_v29, 2  ;;  %v403_v35 = vsub.f32 %v347_v46, %v385_v30 }
 0x14c   : > { %v436_v36 = vrot.slane %v435_v31, 2  ;;  %v397_v37 = vmax.f32 %v395_v26, %v396_v32  ;;  %v404_v38 = vsub.f32 %v348_v51, %v391_v33 }
 0x14d   : > { %v1044_v39 = vpop.eup %769  ;;  %v425_v40 = vadd.f32 %v424_v34, %v423_v29  ;;  %v416_v41 = vmul.f32 1.442695, %v403_v35 }
 0x14e   : > { %v1046_v42 = vpop.eup %771  ;;  %v437_v43 = vadd.f32 %v436_v36, %v435_v31  ;;  %v446_v44 = vrot.slane %v1044_v39, 4  ;;  %v405_v45 = vsub.f32 %v349_v57, %v397_v37  ;;  %v418_v47 = vmul.f32 1.442695, %v404_v38 }
 0x14f   : > { %v1049_v48 = vpop.eup %773  ;;  %v426_v49 = vrot.slane %v425_v40, 1  ;;  %v428_v50 = vrot.slane %v1046_v42, 4  ;;  %775 = vpow2.f32 %v416_v41 }
 0x150   : > { %v438_v46 = vrot.slane %v437_v43, 1  ;;  %v447_v51 = vadd.f32 %v1044_v39, %v446_v44  ;;  %v440_v52 = vrot.slane %v1049_v48, 4  ;;  %v420_v53 = vmul.f32 1.442695, %v405_v45 }
 0x151   : > { %v427_v54 = vadd.f32 %v426_v49, %v425_v40  ;;  %v429_v55 = vadd.f32 %v1046_v42, %v428_v50  ;;  %777 = vpow2.f32 %v418_v47 }
 0x152   : > { %v439_v56 = vadd.f32 %v438_v46, %v437_v43  ;;  %v448_v58 = vrot.slane %v447_v51, 2  ;;  %v441_v57 = vadd.f32 %v1049_v48, %v440_v52  ;;  %779 = vpow2.f32 %v420_v53 }
 0x153   : > { %781 = vrcp.f32 %v427_v54  ;;  %v430_v59 = vrot.slane %v429_v55, 2 }
 0x154   : > { %783 = vrcp.f32 %v439_v56  ;;  %v449_v60 = vadd.f32 %v448_v58, %v447_v51  ;;  %v442_v61 = vrot.slane %v441_v57, 2 }
 0x155   : > { %v1056_v62 = vpop.eup %775  ;;  %v431_v63 = vadd.f32 %v430_v59, %v429_v55 }
 0x156   : > { %v450_v0 = vrot.slane %v449_v60, 1  ;;  %v443_v1 = vadd.f32 %v442_v61, %v441_v57  ;;  %v452_v3 = vrot.slane %v1056_v62, 4 }
 0x157   : > { %v1059_v4 = vpop.eup %777  ;;  %v432_v5 = vrot.slane %v431_v63, 1 }
 0x158   : > { %v1061_v6 = vpop.eup %779  ;;  %v451_v7 = vadd.f32 %v450_v0, %v449_v60  ;;  %v444_v8 = vrot.slane %v443_v1, 1  ;;  %v453_v9 = vadd.f32 %v1056_v62, %v452_v3  ;;  %v458_v10 = vrot.slane %v1059_v4, 4 }
 0x159   : > { %v782_v2 = vpop.eup %781  ;;  %v433_v12 = vadd.f32 %v432_v5, %v431_v63  ;;  %v464_v13 = vrot.slane %v1061_v6, 4 }
 0x15a   : > { %v784_v24 = vpop.eup %783  ;;  %v478_v25 = vmul.f32 %v782_v2, %v427_v54  ;;  %785 = vrcp.f32 %v451_v7  ;;  %v445_v14 = vadd.f32 %v444_v8, %v443_v1  ;;  %v454_v27 = vrot.slane %v453_v9, 2 }
 0x15b   : > { %v480_v26 = vmul.f32 %v784_v24, %v439_v56  ;;  %787 = vrcp.f32 %v433_v12  ;;  %v465_v28 = vadd.f32 %v1061_v6, %v464_v13  ;;  %v459_v29 = vadd.f32 %v1059_v4, %v458_v10 }
 0x15c   : > { %v486_v30 = vsub.f32 2.0, %v478_v25  ;;  %789 = vrcp.f32 %v445_v14  ;;  %v455_v31 = vadd.f32 %v454_v27, %v453_v9 }
 0x15d   : > { %v488_v32 = vsub.f32 2.0, %v480_v26  ;;  %v466_v33 = vrot.slane %v465_v28, 2  ;;  %v460_v34 = vrot.slane %v459_v29, 2 }
 0x15e   : > { %v494_v35 = vmul.f32 %v782_v2, %v486_v30  ;;  %v456_v36 = vrot.slane %v455_v31, 1 }
 0x15f   : > { %v496_v37 = vmul.f32 %v784_v24, %v488_v32  ;;  %v467_v38 = vadd.f32 %v466_v33, %v465_v28  ;;  %v461_v40 = vadd.f32 %v460_v34, %v459_v29 }
 0x160   : > { %v786_v41 = vpop.eup %785  ;;  %v502_v43 = vmul.f32 %v1036_v11, %v494_v35  ;;  %v457_v44 = vadd.f32 %v456_v36, %v455_v31 }
 0x161   : > { %v788_v45 = vpop.eup %787  ;;  %v504_v47 = vmul.f32 %v1038_v15, %v496_v37  ;;  %v482_v49 = vmul.f32 %v786_v41, %v451_v7  ;;  %v462_v50 = vrot.slane %v461_v40, 1  ;;  %v468_v46 = vrot.slane %v467_v38, 1 }
 0x162   : > { %v790_v51 = vpop.eup %789  ;;  %v510_v52 = vmul.f32 %v502_v43, %v998_v16  ;;  %v479_v53 = vmul.f32 %v788_v45, %v433_v12  ;;  %791 = vrcp.f32 %v457_v44 }
 0x163   : > { %v512_v54 = vmul.f32 %v504_v47, %v1000_v17  ;;  %v490_v55 = vsub.f32 2.0, %v482_v49  ;;  %v481_v56 = vmul.f32 %v790_v51, %v445_v14  ;;  %v463_v58 = vadd.f32 %v462_v50, %v461_v40 }
 0x164   : > { %v518_v57 = vrot.slane %v510_v52, 4  ;;  %v487_v59 = vsub.f32 2.0, %v479_v53  ;;  %v469_v11 = vadd.f32 %v468_v46, %v467_v38 }
 0x165   : > { %v530_v60 = vrot.slane %v512_v54, 4  ;;  %v498_v61 = vmul.f32 %v786_v41, %v490_v55  ;;  %v489_v63 = vsub.f32 2.0, %v481_v56  ;;  %793 = vrcp.f32 %v463_v58 }
 0x166   : > { %v519_v15 = vadd.f32 %v518_v57, %v510_v52  ;;  %v495_v0 = vmul.f32 %v788_v45, %v487_v59  ;;  %795 = vrcp.f32 %v469_v11 }
 0x167   : > { %v506_v1 = vmul.f32 %v1044_v39, %v498_v61  ;;  %v497_v16 = vmul.f32 %v790_v51, %v489_v63  ;;  %v531_v3 = vadd.f32 %v530_v60, %v512_v54 }
 0x168   : > { %v792_v5 = vpop.eup %791  ;;  %v503_v17 = vmul.f32 %v1046_v42, %v495_v0  ;;  %v520_v2 = vrot.slane %v519_v15, 2 }
 0x169   : > { %v505_v7 = vmul.f32 %v1049_v48, %v497_v16  ;;  %v483_v8 = vmul.f32 %v792_v5, %v457_v44  ;;  %v514_v9 = vmul.f32 %v506_v1, %v1002_v18  ;;  %v532_v25 = vrot.slane %v531_v3, 2 }
 0x16a   : > { %v511_v10 = vmul.f32 %v503_v17, %v1010_v20  ;;  %v521_v31 = vadd.f32 %v520_v2, %v519_v15 }
 0x16b   : > { %v794_v12 = vpop.eup %793  ;;  %v513_v13 = vmul.f32 %v505_v7, %v1012_v21  ;;  %v491_v24 = vsub.f32 2.0, %v483_v8  ;;  %v542_v14 = vrot.slane %v514_v9, 4  ;;  %v533_v33 = vadd.f32 %v532_v25, %v531_v3 }
 0x16c   : > { %v796_v39 = vpop.eup %795  ;;  %v524_v27 = vrot.slane %v511_v10, 4  ;;  %v484_v26 = vmul.f32 %v794_v12, %v463_v58  ;;  %v522_v43 = vrot.slane %v521_v31, 1 }
 0x16d   : > { %v485_v28 = vmul.f32 %v796_v39, %v469_v11  ;;  %v499_v29 = vmul.f32 %v792_v5, %v491_v24  ;;  %v536_v42 = vrot.slane %v513_v13, 4  ;;  %v543_v32 = vadd.f32 %v542_v14, %v514_v9 }
 0x16e   : > { %v525_v30 = vadd.f32 %v524_v27, %v511_v10  ;;  %v492_v48 = vsub.f32 2.0, %v484_v26  ;;  %v534_v47 = vrot.slane %v533_v33, 1  ;;  %v523_v54 = vadd.f32 %v522_v43, %v521_v31 }
 0x16f   : > { %v493_v18 = vsub.f32 2.0, %v485_v28  ;;  %v507_v20 = vmul.f32 %v1056_v62, %v499_v29  ;;  %v537_v34 = vadd.f32 %v536_v42, %v513_v13  ;;  %v544_v36 = vrot.slane %v543_v32, 2 }
 0x170   : > { %v500_v35 = vmul.f32 %v794_v12, %v492_v48  ;;  %v526_v21 = vrot.slane %v525_v30, 2  ;;  %v535_v56 = vadd.f32 %v534_v47, %v533_v33 }
 0x171   : > { %v501_v37 = vmul.f32 %v796_v39, %v493_v18  ;;  %v515_v38 = vmul.f32 %v507_v20, %v1014_v22  ;;  %v538_v40 = vrot.slane %v537_v34, 2  ;;  %v545_v51 = vadd.f32 %v544_v36, %v543_v32 }
 0x172   : > { %v508_v41 = vmul.f32 %v1059_v4, %v500_v35  ;;  %v527_v44 = vadd.f32 %v526_v21, %v525_v30 }
 0x173   : > { %v509_v45 = vmul.f32 %v1061_v6, %v501_v37  ;;  %v539_v49 = vadd.f32 %v538_v40, %v537_v34  ;;  %v548_v50 = vrot.slane %v515_v38, 4  ;;  %v546_v57 = vrot.slane %v545_v51, 1 }
 0x174   : > { %v516_v62 = vmul.f32 %v508_v41, %v1005_v19  ;;  %v528_v46 = vrot.slane %v527_v44, 1 }
 0x175   : > { %v517_v52 = vmul.f32 %v509_v45, %v1017_v23  ;;  %v540_v53 = vrot.slane %v539_v49, 1  ;;  %v549_v22 = vadd.f32 %v548_v50, %v515_v38  ;;  %v547_v16 = vadd.f32 %v546_v57, %v545_v51 }
 0x176   : > { %v529_v4 = vadd.f32 %v528_v46, %v527_v44  ;;  %v554_v55 = vrot.slane %v516_v62, 4 }
 0x177   : > { %v550_v6 = vrot.slane %v549_v22, 2  ;;  %v560_v58 = vrot.slane %v517_v52, 4  ;;  %v541_v23 = vadd.f32 %v540_v53, %v539_v49 }
 0x178   : > { %v555_v59 = vadd.f32 %v554_v55, %v516_v62  ;;  %v575_v19 = vsel %vm574_vm1, %v529_v4, %v523_v54 }
 0x179   : > { %v551_v11 = vadd.f32 %v550_v6, %v549_v22  ;;  %v561_v60 = vadd.f32 %v560_v58, %v517_v52  ;;  %v577_v61 = vsel %vm576_vm2, %v535_v56, %v575_v19 }
 0x17a   : > { %v556_v63 = vrot.slane %v555_v59, 2  ;;  %v579_v1 = vsel %vm578_vm3, %v541_v23, %v577_v61 }
 0x17b   : > { %v552_v15 = vrot.slane %v551_v11, 1  ;;  %v562_v0 = vrot.slane %v561_v60, 2  ;;  %v581_v8 = vsel %vm580_vm4, %v547_v16, %v579_v1 }
 0x17c   : > { %v557_v3 = vadd.f32 %v556_v63, %v555_v59 }
 0x17d   : > { %v553_v5 = vadd.f32 %v552_v15, %v551_v11  ;;  %v563_v17 = vadd.f32 %v562_v0, %v561_v60 }
 0x17e   : > { %v558_v7 = vrot.slane %v557_v3, 1 }
 0x17f   : > { %v564_v9 = vrot.slane %v563_v17, 1  ;;  %v583_v10 = vsel %vm582_vm5, %v553_v5, %v581_v8 }
 0x180   : > { %v559_v2 = vadd.f32 %v558_v7, %v557_v3 }
 0x181   : > { %v565_v12 = vadd.f32 %v564_v9, %v563_v17 }
 0x182   : > { %v585_v13 = vsel %vm584_vm6, %v559_v2, %v583_v10 }
 0x183   : > { %v587_v24 = vsel %vm586_vm7, %v565_v12, %v585_v13 }
 0x184   : > { %589 = vst [vmem:[%s219_s19] sm:$0xff] %v587_v24 }
 0x185   : > { %824 = shalt.err (!%p821_p3)
}
 0x186   : > { %724 = dma.vmem_to_hbm [thread:$0]  (%p931_p5), %s604_s24, 128, %s606_s26, %s591_s27  }
 0x187 PF: > { %p730_p4 = scmp.ge.s32.totalorder %s859_s23, 2  ;;  %s617_s12 = sand.u32 1, %s847_s20  }
 0x188   : > { %s618_s13 = scalar_lea.sflag [#allocation4], %s617_s12 }
 0x189   : > { %p727_p7 = pnand %p730_p4, %p935_p6 }
 0x18b   : > { %p728_p8 = pneg %p727_p7 }
 0x18d   : > { %842 = dma.done.wait (%p728_p8), %s618_s13, 128  }
 0x18e   : > { %844 = vsyncadd (%p728_p8), %s618_s13, 4294967168  ;;  %p16_p9 = scmp.ge.s32.totalorder %s917_s25, 4   ;;  %s1131_s20 = smov %s851_s21 }
 0x18f   : > { %s1132_s21 = smov %s855_s22  ;;  %s1133_s22 = smov %s929_s28 }
 0x190   : > { %s1134_s23 = smov %s917_s25  ;;  %18 = sbr.rel (!%p16_p9) target bundleno = 5 (0x5), region = 75 }
 0x195   :  { %624 = vsyncpa [#allocation4], 1 }
 0x196   :  { %626 = vsyncpa [#allocation4 + $0x1], 1 }

</bundles_post_ra>
